<compile_context>
chip_gen: v7x
topology: tpu7x:2x2x1
jax: 0.10.0
libtpu: 0.0.40
codegen_flags: <defaults>
</compile_context>

<pallas_src>
import functools

import numpy as np
import jax
import jax.numpy as jnp
from jax.experimental import pallas as pl
from jax.experimental.pallas import tpu as pltpu

LN_EPS = 1e-5          # torch.nn.LayerNorm default
LEAKY_SLOPE = 0.2      # nn.LeakyReLU(0.2)


# ----------------------------------------------------------------------------
# In-kernel helpers
# ----------------------------------------------------------------------------
def _leaky_relu(x):
    return jnp.where(x >= 0, x, LEAKY_SLOPE * x)


def _layer_norm(y, gamma, beta):
    mean = jnp.mean(y, axis=-1, keepdims=True)
    var = jnp.mean((y - mean) ** 2, axis=-1, keepdims=True)
    return (y - mean) * jax.lax.rsqrt(var + LN_EPS) * gamma + beta


# ----------------------------------------------------------------------------
# Fused forward kernel: one batch tile per grid step, everything in VMEM.
# ----------------------------------------------------------------------------
def fused_vae_kernel(
    # batch-tiled inputs
    x_ref, eps_ref,
    # encoder layer 0 (Linear + LeakyReLU + LayerNorm)
    e0_wt_ref, e0_b_ref, ln0_g_ref, ln0_b_ref,
    # encoder harmonic layer (harm pre-folded into weight) + LayerNorm
    e1_weff_ref, e1_b_ref, e1_maskt_ref, ln1_g_ref, ln1_b_ref,
    # latent: concatenated [mu | log_var] projection
    mv_wt_ref, mv_b_ref,
    # decoder layer 0 (Linear + LeakyReLU)
    d0_wt_ref, d0_b_ref,
    # decoder harmonic layer (no LayerNorm)
    d1_weff_ref, d1_b_ref, d1_maskt_ref,
    # output layer (Linear + sigmoid)
    out_wt_ref, out_b_ref,
    # outputs
    recon_ref, z_ref, mu_ref, lv_ref,
    *, latent_dim):
    x = x_ref[...]

    # ---- encoder layer 0: linear -> leaky_relu -> layernorm ----
    h = jnp.dot(x, e0_wt_ref[...], preferred_element_type=jnp.float32)
    h = _leaky_relu(h + e0_b_ref[...])
    h = _layer_norm(h, ln0_g_ref[...], ln0_b_ref[...])

    # ---- encoder harmonic layer: W_eff = W.T + hw * harm @ W.T (pre-folded) ----
    lin = jnp.dot(h, e1_weff_ref[...], preferred_element_type=jnp.float32) + e1_b_ref[...]
    mask_eff = 0.2 * jnp.dot(jnp.abs(h), e1_maskt_ref[...],
                             preferred_element_type=jnp.float32)
    h = _leaky_relu(lin * (1.0 - mask_eff))
    h = _layer_norm(h, ln1_g_ref[...], ln1_b_ref[...])

    # ---- latent: one matmul for [mu | log_var], reparameterize ----
    mu_lv = jnp.dot(h, mv_wt_ref[...], preferred_element_type=jnp.float32) + mv_b_ref[...]
    mu = mu_lv[:, :latent_dim]
    lv = mu_lv[:, latent_dim:]
    z = mu + eps_ref[...] * jnp.exp(0.5 * lv)

    # ---- decoder layer 0: linear -> leaky_relu ----
    d = jnp.dot(z, d0_wt_ref[...], preferred_element_type=jnp.float32)
    d = _leaky_relu(d + d0_b_ref[...])

    # ---- decoder harmonic layer (no layernorm) ----
    lin = jnp.dot(d, d1_weff_ref[...], preferred_element_type=jnp.float32) + d1_b_ref[...]
    mask_eff = 0.2 * jnp.dot(jnp.abs(d), d1_maskt_ref[...],
                             preferred_element_type=jnp.float32)
    d = _leaky_relu(lin * (1.0 - mask_eff))

    # ---- output layer: linear -> sigmoid ----
    r = jnp.dot(d, out_wt_ref[...], preferred_element_type=jnp.float32) + out_b_ref[...]

    recon_ref[...] = jax.nn.sigmoid(r).astype(recon_ref.dtype)
    z_ref[...] = z.astype(z_ref.dtype)
    mu_ref[...] = mu.astype(mu_ref.dtype)
    lv_ref[...] = lv.astype(lv_ref.dtype)


# ----------------------------------------------------------------------------
# Wrapper: fold harmonic matrices into the weights, one pallas_call.
# ----------------------------------------------------------------------------
def harmonic_vae_forward(params, x, eps):
    B, input_dim = x.shape
    latent_dim = eps.shape[1]
    h0 = params["e0_wt"].shape[1]
    h1 = params["e1_wt"].shape[1]
    # HarmonicLayer's `combined * (1 - masking)` only broadcasts when in == out.
    assert h0 == h1, "HarmonicLayer masking broadcast requires equal hidden dims"

    # Fold the harmonic path into the weight (tiny XLA matmuls, once per call).
    e1_weff = params["e1_wt"] + params["e1_hw"] * jnp.dot(params["e1_harm"],
                                                          params["e1_wt"])
    d1_weff = params["d1_wt"] + params["d1_hw"] * jnp.dot(params["d1_harm"],
                                                          params["d1_wt"])

    # Batch tiling: 8-row (f32 sublane) tiles; grid axis is parallel → v7x's
    # two TensorCores split the batch.  Falls back to one block otherwise.
    TB = 8 if (B % 8 == 0) else B
    grid = (B // TB,)

    def batch_spec(feat):
        return pl.BlockSpec((TB, feat), lambda b: (b, 0))

    def rep_spec(a):  # parameter: full-array block, same block for every step
        return pl.BlockSpec(a.shape, lambda b: (0, 0))

    param_list = [
        params["e0_wt"], params["e0_b"], params["ln0_g"], params["ln0_b"],
        e1_weff, params["e1_b"], params["e1_maskt"],
        params["ln1_g"], params["ln1_b"],
        params["mv_wt"], params["mv_b"],
        params["d0_wt"], params["d0_b"],
        d1_weff, params["d1_b"], params["d1_maskt"],
        params["out_wt"], params["out_b"],
    ]

    in_specs = ([batch_spec(input_dim), batch_spec(latent_dim)]
                + [rep_spec(a) for a in param_list])
    out_specs = (batch_spec(input_dim), batch_spec(latent_dim),
                 batch_spec(latent_dim), batch_spec(latent_dim))
    out_shape = (
        jax.ShapeDtypeStruct((B, input_dim), jnp.float32),
        jax.ShapeDtypeStruct((B, latent_dim), jnp.float32),
        jax.ShapeDtypeStruct((B, latent_dim), jnp.float32),
        jax.ShapeDtypeStruct((B, latent_dim), jnp.float32),
    )

    return pl.pallas_call(
        functools.partial(fused_vae_kernel, latent_dim=latent_dim),
        out_shape=out_shape,
        grid_spec=pltpu.PrefetchScalarGridSpec(
            num_scalar_prefetch=0,
            grid=grid,
            in_specs=in_specs,
            out_specs=out_specs,
        ),
        compiler_params=pltpu.CompilerParams(
            dimension_semantics=("parallel",)),
    )(x, eps, *param_list)


# ----------------------------------------------------------------------------
# Deterministic buffer / parameter construction (host-side, mirrors __init__)
# ----------------------------------------------------------------------------
def _hz_to_mel(f):
    return 2595.0 * np.log10(1.0 + f / 700.0)


def _mel_frequencies(n_mels, sample_rate):
    min_mel = _hz_to_mel(20.0)
    max_mel = _hz_to_mel(sample_rate / 2.0)
    mels = np.linspace(min_mel, max_mel, n_mels)
    return 700.0 * (10.0 ** (mels / 2595.0) - 1.0)


def create_harmonic_matrix(size, sample_rate, n_mels, is_mel_scale=True):
    m = np.zeros((size, size), np.float64)
    if is_mel_scale and n_mels > 0:
        freqs = _mel_frequencies(n_mels, sample_rate)
        scores = {1.0: 1.0, 0.667: 0.9, 0.75: 0.8, 0.8: 0.7,
                  0.833: 0.6, 0.889: 0.5, 0.944: 0.3}
        for i in range(len(freqs)):
            for j in range(len(freqs)):
                if i == j:
                    m[i, j] = 1.0
                else:
                    r = freqs[i] / freqs[j]
                    if r > 1:
                        r = 1.0 / r
                    c = 0.0
                    for tr, w in scores.items():
                        width = 0.01 if tr == 1.0 else 0.02
                        c += w * np.exp(-((r - tr) ** 2) / width)
                    m[i, j] = c
    else:
        for i in range(size):
            for j in range(size):
                if i == j:
                    m[i, j] = 1.0
                else:
                    r = (i + 1) / (j + 1)
                    if r > 1:
                        r = 1.0 / r
                    m[i, j] = sum(np.exp(-10.0 * (r - cr) ** 2)
                                  for cr in [1.0, 0.667, 0.75, 0.8, 0.833])
    return (m / m.max()).astype(np.float32)


def create_masking_matrix(size, n_freqs):
    cb = max(1, int(n_freqs * 0.05))
    m = np.zeros((size, size), np.float64)
    for i in range(size):
        for j in range(max(0, i - cb), min(size, i + cb + 1)):
            if j <= i:
                m[i, j] = np.exp(-0.5 * ((j - i) / cb) ** 2)
            else:
                m[i, j] = np.exp(-1.0 * ((j - i) / cb) ** 2)
    return (m / m.max()).astype(np.float32)


def _linear_init(key, out_f, in_f):
    kw, kb = jax.random.split(key)
    bound = 1.0 / np.sqrt(in_f)
    w = jax.random.uniform(kw, (out_f, in_f), jnp.float32, -bound, bound)
    b = jax.random.uniform(kb, (out_f,), jnp.float32, -bound, bound)
    return w, b


def init_params(key, input_dim, hidden_dims, latent_dim, sample_rate, n_mels):
    """Weights stored pre-transposed (in, out); biases / LN params as (1, out)."""
    h0, h1 = hidden_dims
    keys = jax.random.split(key, 8)
    p = {}

    w, b = _linear_init(keys[0], h0, input_dim)
    p["e0_wt"] = w.T
    p["e0_b"] = b.reshape(1, -1)
    p["ln0_g"] = jnp.ones((1, h0), jnp.float32)
    p["ln0_b"] = jnp.zeros((1, h0), jnp.float32)

    w, b = _linear_init(keys[1], h1, h0)
    p["e1_wt"] = w.T                                               # (h0, h1)
    p["e1_b"] = b.reshape(1, -1)
    p["e1_harm"] = jnp.asarray(create_harmonic_matrix(h0, sample_rate, n_mels))
    p["e1_maskt"] = jnp.asarray(create_masking_matrix(h0, n_mels)).T
    p["e1_hw"] = jnp.asarray(0.5, jnp.float32)
    p["ln1_g"] = jnp.ones((1, h1), jnp.float32)
    p["ln1_b"] = jnp.zeros((1, h1), jnp.float32)

    wm, bm = _linear_init(keys[2], latent_dim, h1)
    wv, bv = _linear_init(keys[3], latent_dim, h1)
    p["mv_wt"] = jnp.concatenate([wm.T, wv.T], axis=1)             # (h1, 2L)
    p["mv_b"] = jnp.concatenate([bm, bv]).reshape(1, -1)

    w, b = _linear_init(keys[4], h1, latent_dim)
    p["d0_wt"] = w.T
    p["d0_b"] = b.reshape(1, -1)

    w, b = _linear_init(keys[5], h0, h1)
    p["d1_wt"] = w.T                                               # (h1, h0)
    p["d1_b"] = b.reshape(1, -1)
    p["d1_harm"] = jnp.asarray(create_harmonic_matrix(h1, sample_rate, n_mels))
    p["d1_maskt"] = jnp.asarray(create_masking_matrix(h1, n_mels)).T
    p["d1_hw"] = jnp.asarray(0.5, jnp.float32)

    w, b = _linear_init(keys[6], input_dim, h0)
    p["out_wt"] = w.T
    p["out_b"] = b.reshape(1, -1)
    return p, keys[7]


# ----------------------------------------------------------------------------
if __name__ == "__main__":
    # Small, self-consistent configuration:
    #   hidden dims equal so the HarmonicLayer masking broadcast is well-formed,
    #   n_mels == hidden dim so the harmonic-matrix construction stays in bounds,
    #   batch = 16 so the parallel batch grid has 8-row (f32 sublane) tiles.
    batch = 16
    input_dim = 64
    hidden_dims = [32, 32]
    latent_dim = 8
    sample_rate = 22050
    n_mels = 32

    key = jax.random.PRNGKey(0)
    params, key = init_params(key, input_dim, hidden_dims, latent_dim,
                              sample_rate, n_mels)
    kx, keps = jax.random.split(key)
    x = jax.random.uniform(kx, (batch, input_dim), jnp.float32)
    # reparameterization noise (torch.randn_like) generated deterministically here
    eps = jax.random.normal(keps, (batch, latent_dim), jnp.float32)

    recon, z, mu, log_var = jax.jit(harmonic_vae_forward)(params, x, eps)
    jax.block_until_ready((recon, z, mu, log_var))

    assert recon.shape == (batch, input_dim)
    assert z.shape == (batch, latent_dim)
    assert mu.shape == (batch, latent_dim)
    assert log_var.shape == (batch, latent_dim)
    assert bool(jnp.all(jnp.isfinite(recon)))
    assert bool(jnp.all((recon >= 0.0) & (recon <= 1.0)))
    print("KERNEL_OK")
</pallas_src>

<mosaic_0001>
module attributes {stable_mosaic.version = 11 : i64} {
  func.func @fused_vae_kernel(%arg0: i32, %arg1: memref<8x64xf32, #tpu.memory_space<vmem>>, %arg2: memref<8x8xf32, #tpu.memory_space<vmem>>, %arg3: memref<64x32xf32, #tpu.memory_space<vmem>>, %arg4: memref<1x32xf32, #tpu.memory_space<vmem>>, %arg5: memref<1x32xf32, #tpu.memory_space<vmem>>, %arg6: memref<1x32xf32, #tpu.memory_space<vmem>>, %arg7: memref<32x32xf32, #tpu.memory_space<vmem>>, %arg8: memref<1x32xf32, #tpu.memory_space<vmem>>, %arg9: memref<32x32xf32, #tpu.memory_space<vmem>>, %arg10: memref<1x32xf32, #tpu.memory_space<vmem>>, %arg11: memref<1x32xf32, #tpu.memory_space<vmem>>, %arg12: memref<32x16xf32, #tpu.memory_space<vmem>>, %arg13: memref<1x16xf32, #tpu.memory_space<vmem>>, %arg14: memref<8x32xf32, #tpu.memory_space<vmem>>, %arg15: memref<1x32xf32, #tpu.memory_space<vmem>>, %arg16: memref<32x32xf32, #tpu.memory_space<vmem>>, %arg17: memref<1x32xf32, #tpu.memory_space<vmem>>, %arg18: memref<32x32xf32, #tpu.memory_space<vmem>>, %arg19: memref<32x64xf32, #tpu.memory_space<vmem>>, %arg20: memref<1x64xf32, #tpu.memory_space<vmem>>, %arg21: memref<8x64xf32, #tpu.memory_space<vmem>>, %arg22: memref<8x8xf32, #tpu.memory_space<vmem>>, %arg23: memref<8x8xf32, #tpu.memory_space<vmem>>, %arg24: memref<8x8xf32, #tpu.memory_space<vmem>>) attributes {dimension_semantics = [#tpu.dimension_semantics<parallel>], iteration_bounds = array<i64: 2>, scalar_prefetch = 0 : i64, scratch_operands = 0 : i64, tpu.core_type = #tpu.core_type<tc>, window_params = [{transform_indices = @transform_0, window_bounds = array<i64: 8, 64>}, {transform_indices = @transform_1, window_bounds = array<i64: 8, 8>}, {pipeline_mode = #tpu.pipeline_mode<synchronous>, transform_indices = @transform_2, window_bounds = array<i64: 64, 32>}, {pipeline_mode = #tpu.pipeline_mode<synchronous>, transform_indices = @transform_3, window_bounds = array<i64: 1, 32>}, {pipeline_mode = #tpu.pipeline_mode<synchronous>, transform_indices = @transform_4, window_bounds = array<i64: 1, 32>}, {pipeline_mode = #tpu.pipeline_mode<synchronous>, transform_indices = @transform_5, window_bounds = array<i64: 1, 32>}, {pipeline_mode = #tpu.pipeline_mode<synchronous>, transform_indices = @transform_6, window_bounds = array<i64: 32, 32>}, {pipeline_mode = #tpu.pipeline_mode<synchronous>, transform_indices = @transform_7, window_bounds = array<i64: 1, 32>}, {pipeline_mode = #tpu.pipeline_mode<synchronous>, transform_indices = @transform_8, window_bounds = array<i64: 32, 32>}, {pipeline_mode = #tpu.pipeline_mode<synchronous>, transform_indices = @transform_9, window_bounds = array<i64: 1, 32>}, {pipeline_mode = #tpu.pipeline_mode<synchronous>, transform_indices = @transform_10, window_bounds = array<i64: 1, 32>}, {pipeline_mode = #tpu.pipeline_mode<synchronous>, transform_indices = @transform_11, window_bounds = array<i64: 32, 16>}, {pipeline_mode = #tpu.pipeline_mode<synchronous>, transform_indices = @transform_12, window_bounds = array<i64: 1, 16>}, {pipeline_mode = #tpu.pipeline_mode<synchronous>, transform_indices = @transform_13, window_bounds = array<i64: 8, 32>}, {pipeline_mode = #tpu.pipeline_mode<synchronous>, transform_indices = @transform_14, window_bounds = array<i64: 1, 32>}, {pipeline_mode = #tpu.pipeline_mode<synchronous>, transform_indices = @transform_15, window_bounds = array<i64: 32, 32>}, {pipeline_mode = #tpu.pipeline_mode<synchronous>, transform_indices = @transform_16, window_bounds = array<i64: 1, 32>}, {pipeline_mode = #tpu.pipeline_mode<synchronous>, transform_indices = @transform_17, window_bounds = array<i64: 32, 32>}, {pipeline_mode = #tpu.pipeline_mode<synchronous>, transform_indices = @transform_18, window_bounds = array<i64: 32, 64>}, {pipeline_mode = #tpu.pipeline_mode<synchronous>, transform_indices = @transform_19, window_bounds = array<i64: 1, 64>}, {transform_indices = @transform_20, window_bounds = array<i64: 8, 64>}, {transform_indices = @transform_21, window_bounds = array<i64: 8, 8>}, {transform_indices = @transform_22, window_bounds = array<i64: 8, 8>}, {transform_indices = @transform_23, window_bounds = array<i64: 8, 8>}]} {
    %c0 = arith.constant 0 : index
    %c0_0 = arith.constant 0 : index
    %0 = vector.load %arg1[%c0, %c0_0] : memref<8x64xf32, #tpu.memory_space<vmem>>, vector<8x64xf32>
    %c0_1 = arith.constant 0 : index
    %c0_2 = arith.constant 0 : index
    %1 = vector.load %arg3[%c0_1, %c0_2] : memref<64x32xf32, #tpu.memory_space<vmem>>, vector<64x32xf32>
    %cst = arith.constant dense<0.000000e+00> : vector<8x32xf32>
    %2 = tpu.matmul %0, %1, %cst {dimension_numbers = #tpu.dot_dimension_numbers<[1], [0], [0], [1], [0, 0, 1, 1], [], []>} : vector<8x64xf32>, vector<64x32xf32>, vector<8x32xf32> -> vector<8x32xf32>
    %c0_3 = arith.constant 0 : index
    %c0_4 = arith.constant 0 : index
    %3 = vector.load %arg4[%c0_3, %c0_4] : memref<1x32xf32, #tpu.memory_space<vmem>>, vector<1x32xf32>
    %4 = vector.broadcast %3 : vector<1x32xf32> to vector<8x32xf32>
    %5 = arith.addf %2, %4 : vector<8x32xf32>
    %cst_5 = arith.constant 0.000000e+00 : f32
    %6 = vector.broadcast %cst_5 : f32 to vector<8x32xf32>
    %7 = arith.cmpf oge, %5, %6 : vector<8x32xf32>
    %cst_6 = arith.constant 2.000000e-01 : f32
    %8 = vector.broadcast %cst_6 : f32 to vector<8x32xf32>
    %9 = arith.mulf %8, %5 : vector<8x32xf32>
    %10 = arith.select %7, %5, %9 : vector<8x32xi1>, vector<8x32xf32>
    %c0_7 = arith.constant 0 : index
    %c0_8 = arith.constant 0 : index
    %11 = vector.load %arg5[%c0_7, %c0_8] : memref<1x32xf32, #tpu.memory_space<vmem>>, vector<1x32xf32>
    %c0_9 = arith.constant 0 : index
    %c0_10 = arith.constant 0 : index
    %12 = vector.load %arg6[%c0_9, %c0_10] : memref<1x32xf32, #tpu.memory_space<vmem>>, vector<1x32xf32>
    %cst_11 = arith.constant dense<0.000000e+00> : vector<8xf32>
    %13 = vector.multi_reduction <add>, %10, %cst_11 [1] : vector<8x32xf32> to vector<8xf32>
    %14 = vector.shape_cast %13 : vector<8xf32> to vector<8x1xf32>
    %cst_12 = arith.constant 3.200000e+01 : f32
    %15 = vector.broadcast %cst_12 : f32 to vector<8x1xf32>
    %16 = arith.divf %14, %15 : vector<8x1xf32>
    %17 = vector.broadcast %16 : vector<8x1xf32> to vector<8x32xf32>
    %18 = arith.subf %10, %17 : vector<8x32xf32>
    %19 = arith.mulf %18, %18 : vector<8x32xf32>
    %cst_13 = arith.constant dense<0.000000e+00> : vector<8xf32>
    %20 = vector.multi_reduction <add>, %19, %cst_13 [1] : vector<8x32xf32> to vector<8xf32>
    %21 = vector.shape_cast %20 : vector<8xf32> to vector<8x1xf32>
    %cst_14 = arith.constant 3.200000e+01 : f32
    %22 = vector.broadcast %cst_14 : f32 to vector<8x1xf32>
    %23 = arith.divf %21, %22 : vector<8x1xf32>
    %24 = vector.broadcast %16 : vector<8x1xf32> to vector<8x32xf32>
    %25 = arith.subf %10, %24 : vector<8x32xf32>
    %cst_15 = arith.constant 9.99999974E-6 : f32
    %26 = vector.broadcast %cst_15 : f32 to vector<8x1xf32>
    %27 = arith.addf %23, %26 : vector<8x1xf32>
    %28 = math.rsqrt %27 : vector<8x1xf32>
    %29 = vector.broadcast %28 : vector<8x1xf32> to vector<8x32xf32>
    %30 = arith.mulf %25, %29 : vector<8x32xf32>
    %31 = vector.broadcast %11 : vector<1x32xf32> to vector<8x32xf32>
    %32 = arith.mulf %30, %31 : vector<8x32xf32>
    %33 = vector.broadcast %12 : vector<1x32xf32> to vector<8x32xf32>
    %34 = arith.addf %32, %33 : vector<8x32xf32>
    %c0_16 = arith.constant 0 : index
    %c0_17 = arith.constant 0 : index
    %35 = vector.load %arg7[%c0_16, %c0_17] : memref<32x32xf32, #tpu.memory_space<vmem>>, vector<32x32xf32>
    %cst_18 = arith.constant dense<0.000000e+00> : vector<8x32xf32>
    %36 = tpu.matmul %34, %35, %cst_18 {dimension_numbers = #tpu.dot_dimension_numbers<[1], [0], [0], [1], [0, 0, 1, 1], [], []>} : vector<8x32xf32>, vector<32x32xf32>, vector<8x32xf32> -> vector<8x32xf32>
    %c0_19 = arith.constant 0 : index
    %c0_20 = arith.constant 0 : index
    %37 = vector.load %arg8[%c0_19, %c0_20] : memref<1x32xf32, #tpu.memory_space<vmem>>, vector<1x32xf32>
    %38 = vector.broadcast %37 : vector<1x32xf32> to vector<8x32xf32>
    %39 = arith.addf %36, %38 : vector<8x32xf32>
    %40 = math.absf %34 : vector<8x32xf32>
    %c0_21 = arith.constant 0 : index
    %c0_22 = arith.constant 0 : index
    %41 = vector.load %arg9[%c0_21, %c0_22] : memref<32x32xf32, #tpu.memory_space<vmem>>, vector<32x32xf32>
    %cst_23 = arith.constant dense<0.000000e+00> : vector<8x32xf32>
    %42 = tpu.matmul %40, %41, %cst_23 {dimension_numbers = #tpu.dot_dimension_numbers<[1], [0], [0], [1], [0, 0, 1, 1], [], []>} : vector<8x32xf32>, vector<32x32xf32>, vector<8x32xf32> -> vector<8x32xf32>
    %cst_24 = arith.constant 2.000000e-01 : f32
    %43 = vector.broadcast %cst_24 : f32 to vector<8x32xf32>
    %44 = arith.mulf %43, %42 : vector<8x32xf32>
    %cst_25 = arith.constant 1.000000e+00 : f32
    %45 = vector.broadcast %cst_25 : f32 to vector<8x32xf32>
    %46 = arith.subf %45, %44 : vector<8x32xf32>
    %47 = arith.mulf %39, %46 : vector<8x32xf32>
    %cst_26 = arith.constant 0.000000e+00 : f32
    %48 = vector.broadcast %cst_26 : f32 to vector<8x32xf32>
    %49 = arith.cmpf oge, %47, %48 : vector<8x32xf32>
    %cst_27 = arith.constant 2.000000e-01 : f32
    %50 = vector.broadcast %cst_27 : f32 to vector<8x32xf32>
    %51 = arith.mulf %50, %47 : vector<8x32xf32>
    %52 = arith.select %49, %47, %51 : vector<8x32xi1>, vector<8x32xf32>
    %c0_28 = arith.constant 0 : index
    %c0_29 = arith.constant 0 : index
    %53 = vector.load %arg10[%c0_28, %c0_29] : memref<1x32xf32, #tpu.memory_space<vmem>>, vector<1x32xf32>
    %c0_30 = arith.constant 0 : index
    %c0_31 = arith.constant 0 : index
    %54 = vector.load %arg11[%c0_30, %c0_31] : memref<1x32xf32, #tpu.memory_space<vmem>>, vector<1x32xf32>
    %cst_32 = arith.constant dense<0.000000e+00> : vector<8xf32>
    %55 = vector.multi_reduction <add>, %52, %cst_32 [1] : vector<8x32xf32> to vector<8xf32>
    %56 = vector.shape_cast %55 : vector<8xf32> to vector<8x1xf32>
    %cst_33 = arith.constant 3.200000e+01 : f32
    %57 = vector.broadcast %cst_33 : f32 to vector<8x1xf32>
    %58 = arith.divf %56, %57 : vector<8x1xf32>
    %59 = vector.broadcast %58 : vector<8x1xf32> to vector<8x32xf32>
    %60 = arith.subf %52, %59 : vector<8x32xf32>
    %61 = arith.mulf %60, %60 : vector<8x32xf32>
    %cst_34 = arith.constant dense<0.000000e+00> : vector<8xf32>
    %62 = vector.multi_reduction <add>, %61, %cst_34 [1] : vector<8x32xf32> to vector<8xf32>
    %63 = vector.shape_cast %62 : vector<8xf32> to vector<8x1xf32>
    %cst_35 = arith.constant 3.200000e+01 : f32
    %64 = vector.broadcast %cst_35 : f32 to vector<8x1xf32>
    %65 = arith.divf %63, %64 : vector<8x1xf32>
    %66 = vector.broadcast %58 : vector<8x1xf32> to vector<8x32xf32>
    %67 = arith.subf %52, %66 : vector<8x32xf32>
    %cst_36 = arith.constant 9.99999974E-6 : f32
    %68 = vector.broadcast %cst_36 : f32 to vector<8x1xf32>
    %69 = arith.addf %65, %68 : vector<8x1xf32>
    %70 = math.rsqrt %69 : vector<8x1xf32>
    %71 = vector.broadcast %70 : vector<8x1xf32> to vector<8x32xf32>
    %72 = arith.mulf %67, %71 : vector<8x32xf32>
    %73 = vector.broadcast %53 : vector<1x32xf32> to vector<8x32xf32>
    %74 = arith.mulf %72, %73 : vector<8x32xf32>
    %75 = vector.broadcast %54 : vector<1x32xf32> to vector<8x32xf32>
    %76 = arith.addf %74, %75 : vector<8x32xf32>
    %c0_37 = arith.constant 0 : index
    %c0_38 = arith.constant 0 : index
    %77 = vector.load %arg12[%c0_37, %c0_38] : memref<32x16xf32, #tpu.memory_space<vmem>>, vector<32x16xf32>
    %cst_39 = arith.constant dense<0.000000e+00> : vector<8x16xf32>
    %78 = tpu.matmul %76, %77, %cst_39 {dimension_numbers = #tpu.dot_dimension_numbers<[1], [0], [0], [1], [0, 0, 1, 1], [], []>} : vector<8x32xf32>, vector<32x16xf32>, vector<8x16xf32> -> vector<8x16xf32>
    %c0_40 = arith.constant 0 : index
    %c0_41 = arith.constant 0 : index
    %79 = vector.load %arg13[%c0_40, %c0_41] : memref<1x16xf32, #tpu.memory_space<vmem>>, vector<1x16xf32>
    %80 = vector.broadcast %79 : vector<1x16xf32> to vector<8x16xf32>
    %81 = arith.addf %78, %80 : vector<8x16xf32>
    %82 = vector.extract_strided_slice %81 {offsets = [0, 0], sizes = [8, 8], strides = [1, 1]} : vector<8x16xf32> to vector<8x8xf32>
    %83 = vector.extract_strided_slice %81 {offsets = [0, 8], sizes = [8, 8], strides = [1, 1]} : vector<8x16xf32> to vector<8x8xf32>
    %c0_42 = arith.constant 0 : index
    %c0_43 = arith.constant 0 : index
    %84 = vector.load %arg2[%c0_42, %c0_43] : memref<8x8xf32, #tpu.memory_space<vmem>>, vector<8x8xf32>
    %cst_44 = arith.constant 5.000000e-01 : f32
    %85 = vector.broadcast %cst_44 : f32 to vector<8x8xf32>
    %86 = arith.mulf %85, %83 : vector<8x8xf32>
    %87 = math.exp %86 : vector<8x8xf32>
    %88 = arith.mulf %84, %87 : vector<8x8xf32>
    %89 = arith.addf %82, %88 : vector<8x8xf32>
    %c0_45 = arith.constant 0 : index
    %c0_46 = arith.constant 0 : index
    %90 = vector.load %arg14[%c0_45, %c0_46] : memref<8x32xf32, #tpu.memory_space<vmem>>, vector<8x32xf32>
    %cst_47 = arith.constant dense<0.000000e+00> : vector<8x32xf32>
    %91 = tpu.matmul %89, %90, %cst_47 {dimension_numbers = #tpu.dot_dimension_numbers<[1], [0], [0], [1], [0, 0, 1, 1], [], []>} : vector<8x8xf32>, vector<8x32xf32>, vector<8x32xf32> -> vector<8x32xf32>
    %c0_48 = arith.constant 0 : index
    %c0_49 = arith.constant 0 : index
    %92 = vector.load %arg15[%c0_48, %c0_49] : memref<1x32xf32, #tpu.memory_space<vmem>>, vector<1x32xf32>
    %93 = vector.broadcast %92 : vector<1x32xf32> to vector<8x32xf32>
    %94 = arith.addf %91, %93 : vector<8x32xf32>
    %cst_50 = arith.constant 0.000000e+00 : f32
    %95 = vector.broadcast %cst_50 : f32 to vector<8x32xf32>
    %96 = arith.cmpf oge, %94, %95 : vector<8x32xf32>
    %cst_51 = arith.constant 2.000000e-01 : f32
    %97 = vector.broadcast %cst_51 : f32 to vector<8x32xf32>
    %98 = arith.mulf %97, %94 : vector<8x32xf32>
    %99 = arith.select %96, %94, %98 : vector<8x32xi1>, vector<8x32xf32>
    %c0_52 = arith.constant 0 : index
    %c0_53 = arith.constant 0 : index
    %100 = vector.load %arg16[%c0_52, %c0_53] : memref<32x32xf32, #tpu.memory_space<vmem>>, vector<32x32xf32>
    %cst_54 = arith.constant dense<0.000000e+00> : vector<8x32xf32>
    %101 = tpu.matmul %99, %100, %cst_54 {dimension_numbers = #tpu.dot_dimension_numbers<[1], [0], [0], [1], [0, 0, 1, 1], [], []>} : vector<8x32xf32>, vector<32x32xf32>, vector<8x32xf32> -> vector<8x32xf32>
    %c0_55 = arith.constant 0 : index
    %c0_56 = arith.constant 0 : index
    %102 = vector.load %arg17[%c0_55, %c0_56] : memref<1x32xf32, #tpu.memory_space<vmem>>, vector<1x32xf32>
    %103 = vector.broadcast %102 : vector<1x32xf32> to vector<8x32xf32>
    %104 = arith.addf %101, %103 : vector<8x32xf32>
    %105 = math.absf %99 : vector<8x32xf32>
    %c0_57 = arith.constant 0 : index
    %c0_58 = arith.constant 0 : index
    %106 = vector.load %arg18[%c0_57, %c0_58] : memref<32x32xf32, #tpu.memory_space<vmem>>, vector<32x32xf32>
    %cst_59 = arith.constant dense<0.000000e+00> : vector<8x32xf32>
    %107 = tpu.matmul %105, %106, %cst_59 {dimension_numbers = #tpu.dot_dimension_numbers<[1], [0], [0], [1], [0, 0, 1, 1], [], []>} : vector<8x32xf32>, vector<32x32xf32>, vector<8x32xf32> -> vector<8x32xf32>
    %cst_60 = arith.constant 2.000000e-01 : f32
    %108 = vector.broadcast %cst_60 : f32 to vector<8x32xf32>
    %109 = arith.mulf %108, %107 : vector<8x32xf32>
    %cst_61 = arith.constant 1.000000e+00 : f32
    %110 = vector.broadcast %cst_61 : f32 to vector<8x32xf32>
    %111 = arith.subf %110, %109 : vector<8x32xf32>
    %112 = arith.mulf %104, %111 : vector<8x32xf32>
    %cst_62 = arith.constant 0.000000e+00 : f32
    %113 = vector.broadcast %cst_62 : f32 to vector<8x32xf32>
    %114 = arith.cmpf oge, %112, %113 : vector<8x32xf32>
    %cst_63 = arith.constant 2.000000e-01 : f32
    %115 = vector.broadcast %cst_63 : f32 to vector<8x32xf32>
    %116 = arith.mulf %115, %112 : vector<8x32xf32>
    %117 = arith.select %114, %112, %116 : vector<8x32xi1>, vector<8x32xf32>
    %c0_64 = arith.constant 0 : index
    %c0_65 = arith.constant 0 : index
    %118 = vector.load %arg19[%c0_64, %c0_65] : memref<32x64xf32, #tpu.memory_space<vmem>>, vector<32x64xf32>
    %cst_66 = arith.constant dense<0.000000e+00> : vector<8x64xf32>
    %119 = tpu.matmul %117, %118, %cst_66 {dimension_numbers = #tpu.dot_dimension_numbers<[1], [0], [0], [1], [0, 0, 1, 1], [], []>} : vector<8x32xf32>, vector<32x64xf32>, vector<8x64xf32> -> vector<8x64xf32>
    %c0_67 = arith.constant 0 : index
    %c0_68 = arith.constant 0 : index
    %120 = vector.load %arg20[%c0_67, %c0_68] : memref<1x64xf32, #tpu.memory_space<vmem>>, vector<1x64xf32>
    %121 = vector.broadcast %120 : vector<1x64xf32> to vector<8x64xf32>
    %122 = arith.addf %119, %121 : vector<8x64xf32>
    %123 = arith.negf %122 : vector<8x64xf32>
    %124 = math.exp %123 : vector<8x64xf32>
    %cst_69 = arith.constant 1.000000e+00 : f32
    %125 = vector.broadcast %cst_69 : f32 to vector<8x64xf32>
    %126 = arith.addf %125, %124 : vector<8x64xf32>
    %127 = arith.divf %125, %126 : vector<8x64xf32>
    %c0_70 = arith.constant 0 : index
    %c0_71 = arith.constant 0 : index
    %128 = vector.load %arg21[%c0_70, %c0_71] : memref<8x64xf32, #tpu.memory_space<vmem>>, vector<8x64xf32>
    tpu.vector_store %arg21[%c0_70, %c0_71], %127 {strides = array<i32>} : memref<8x64xf32, #tpu.memory_space<vmem>>, vector<8x64xf32>,
    %c0_72 = arith.constant 0 : index
    %c0_73 = arith.constant 0 : index
    %129 = vector.load %arg22[%c0_72, %c0_73] : memref<8x8xf32, #tpu.memory_space<vmem>>, vector<8x8xf32>
    tpu.vector_store %arg22[%c0_72, %c0_73], %89 {strides = array<i32>} : memref<8x8xf32, #tpu.memory_space<vmem>>, vector<8x8xf32>,
    %c0_74 = arith.constant 0 : index
    %c0_75 = arith.constant 0 : index
    %130 = vector.load %arg23[%c0_74, %c0_75] : memref<8x8xf32, #tpu.memory_space<vmem>>, vector<8x8xf32>
    tpu.vector_store %arg23[%c0_74, %c0_75], %82 {strides = array<i32>} : memref<8x8xf32, #tpu.memory_space<vmem>>, vector<8x8xf32>,
    %c0_76 = arith.constant 0 : index
    %c0_77 = arith.constant 0 : index
    %131 = vector.load %arg24[%c0_76, %c0_77] : memref<8x8xf32, #tpu.memory_space<vmem>>, vector<8x8xf32>
    tpu.vector_store %arg24[%c0_76, %c0_77], %83 {strides = array<i32>} : memref<8x8xf32, #tpu.memory_space<vmem>>, vector<8x8xf32>,
    return
  }
  func.func @transform_0(%arg0: i32) -> (i32, i32) {
    %c0_i32 = arith.constant 0 : i32
    %c0_i32_0 = arith.constant 0 : i32
    return %arg0, %c0_i32 : i32, i32
  }
  func.func @transform_1(%arg0: i32) -> (i32, i32) {
    %c0_i32 = arith.constant 0 : i32
    %c0_i32_0 = arith.constant 0 : i32
    return %arg0, %c0_i32 : i32, i32
  }
  func.func @transform_2(%arg0: i32) -> (i32, i32) {
    %c0_i32 = arith.constant 0 : i32
    %c0_i32_0 = arith.constant 0 : i32
    %c0_i32_1 = arith.constant 0 : i32
    return %c0_i32, %c0_i32_0 : i32, i32
  }
  func.func @transform_3(%arg0: i32) -> (i32, i32) {
    %c0_i32 = arith.constant 0 : i32
    %c0_i32_0 = arith.constant 0 : i32
    %c0_i32_1 = arith.constant 0 : i32
    return %c0_i32, %c0_i32_0 : i32, i32
  }
  func.func @transform_4(%arg0: i32) -> (i32, i32) {
    %c0_i32 = arith.constant 0 : i32
    %c0_i32_0 = arith.constant 0 : i32
    %c0_i32_1 = arith.constant 0 : i32
    return %c0_i32, %c0_i32_0 : i32, i32
  }
  func.func @transform_5(%arg0: i32) -> (i32, i32) {
    %c0_i32 = arith.constant 0 : i32
    %c0_i32_0 = arith.constant 0 : i32
    %c0_i32_1 = arith.constant 0 : i32
    return %c0_i32, %c0_i32_0 : i32, i32
  }
  func.func @transform_6(%arg0: i32) -> (i32, i32) {
    %c0_i32 = arith.constant 0 : i32
    %c0_i32_0 = arith.constant 0 : i32
    %c0_i32_1 = arith.constant 0 : i32
    return %c0_i32, %c0_i32_0 : i32, i32
  }
  func.func @transform_7(%arg0: i32) -> (i32, i32) {
    %c0_i32 = arith.constant 0 : i32
    %c0_i32_0 = arith.constant 0 : i32
    %c0_i32_1 = arith.constant 0 : i32
    return %c0_i32, %c0_i32_0 : i32, i32
  }
  func.func @transform_8(%arg0: i32) -> (i32, i32) {
    %c0_i32 = arith.constant 0 : i32
    %c0_i32_0 = arith.constant 0 : i32
    %c0_i32_1 = arith.constant 0 : i32
    return %c0_i32, %c0_i32_0 : i32, i32
  }
  func.func @transform_9(%arg0: i32) -> (i32, i32) {
    %c0_i32 = arith.constant 0 : i32
    %c0_i32_0 = arith.constant 0 : i32
    %c0_i32_1 = arith.constant 0 : i32
    return %c0_i32, %c0_i32_0 : i32, i32
  }
  func.func @transform_10(%arg0: i32) -> (i32, i32) {
    %c0_i32 = arith.constant 0 : i32
    %c0_i32_0 = arith.constant 0 : i32
    %c0_i32_1 = arith.constant 0 : i32
    return %c0_i32, %c0_i32_0 : i32, i32
  }
  func.func @transform_11(%arg0: i32) -> (i32, i32) {
    %c0_i32 = arith.constant 0 : i32
    %c0_i32_0 = arith.constant 0 : i32
    %c0_i32_1 = arith.constant 0 : i32
    return %c0_i32, %c0_i32_0 : i32, i32
  }
  func.func @transform_12(%arg0: i32) -> (i32, i32) {
    %c0_i32 = arith.constant 0 : i32
    %c0_i32_0 = arith.constant 0 : i32
    %c0_i32_1 = arith.constant 0 : i32
    return %c0_i32, %c0_i32_0 : i32, i32
  }
  func.func @transform_13(%arg0: i32) -> (i32, i32) {
    %c0_i32 = arith.constant 0 : i32
    %c0_i32_0 = arith.constant 0 : i32
    %c0_i32_1 = arith.constant 0 : i32
    return %c0_i32, %c0_i32_0 : i32, i32
  }
  func.func @transform_14(%arg0: i32) -> (i32, i32) {
    %c0_i32 = arith.constant 0 : i32
    %c0_i32_0 = arith.constant 0 : i32
    %c0_i32_1 = arith.constant 0 : i32
    return %c0_i32, %c0_i32_0 : i32, i32
  }
  func.func @transform_15(%arg0: i32) -> (i32, i32) {
    %c0_i32 = arith.constant 0 : i32
    %c0_i32_0 = arith.constant 0 : i32
    %c0_i32_1 = arith.constant 0 : i32
    return %c0_i32, %c0_i32_0 : i32, i32
  }
  func.func @transform_16(%arg0: i32) -> (i32, i32) {
    %c0_i32 = arith.constant 0 : i32
    %c0_i32_0 = arith.constant 0 : i32
    %c0_i32_1 = arith.constant 0 : i32
    return %c0_i32, %c0_i32_0 : i32, i32
  }
  func.func @transform_17(%arg0: i32) -> (i32, i32) {
    %c0_i32 = arith.constant 0 : i32
    %c0_i32_0 = arith.constant 0 : i32
    %c0_i32_1 = arith.constant 0 : i32
    return %c0_i32, %c0_i32_0 : i32, i32
  }
  func.func @transform_18(%arg0: i32) -> (i32, i32) {
    %c0_i32 = arith.constant 0 : i32
    %c0_i32_0 = arith.constant 0 : i32
    %c0_i32_1 = arith.constant 0 : i32
    return %c0_i32, %c0_i32_0 : i32, i32
  }
  func.func @transform_19(%arg0: i32) -> (i32, i32) {
    %c0_i32 = arith.constant 0 : i32
    %c0_i32_0 = arith.constant 0 : i32
    %c0_i32_1 = arith.constant 0 : i32
    return %c0_i32, %c0_i32_0 : i32, i32
  }
  func.func @transform_20(%arg0: i32) -> (i32, i32) {
    %c0_i32 = arith.constant 0 : i32
    %c0_i32_0 = arith.constant 0 : i32
    return %arg0, %c0_i32 : i32, i32
  }
  func.func @transform_21(%arg0: i32) -> (i32, i32) {
    %c0_i32 = arith.constant 0 : i32
    %c0_i32_0 = arith.constant 0 : i32
    return %arg0, %c0_i32 : i32, i32
  }
  func.func @transform_22(%arg0: i32) -> (i32, i32) {
    %c0_i32 = arith.constant 0 : i32
    %c0_i32_0 = arith.constant 0 : i32
    return %arg0, %c0_i32 : i32, i32
  }
  func.func @transform_23(%arg0: i32) -> (i32, i32) {
    %c0_i32 = arith.constant 0 : i32
    %c0_i32_0 = arith.constant 0 : i32
    return %arg0, %c0_i32 : i32, i32
  }
}

</mosaic_0001>

<bundles_post_ra>
// kernel: harmonic_vae_forward.1
= control target key start
LH: loop header
LB: loop body
LE: loop exit
PB: predicated region body
PF: predicated region fallthrough
CT: control target
= control target key end

     0   :  { %s2449_s0 = inlined_call_operand.vmem [shape: f32[16,64], index: 0, kind: input, shape index: {}]   ;;  %s2450_s1 = inlined_call_operand.vmem [shape: f32[16,8], index: 1, kind: input, shape index: {}]   ;;  %s2451_s2 = inlined_call_operand.vmem [shape: f32[64,32], index: 2, kind: input, shape index: {}]   ;;  %s2452_s3 = inlined_call_operand.vmem [shape: f32[1,32], index: 3, kind: input, shape index: {}]   ;;  %s2453_s4 = inlined_call_operand.vmem [shape: f32[1,32], index: 4, kind: input, shape index: {}]   ;;  %s2454_s5 = inlined_call_operand.vmem [shape: f32[1,32], index: 5, kind: input, shape index: {}]   ;;  %s2455_s6 = inlined_call_operand.vmem [shape: f32[32,32], index: 6, kind: input, shape index: {}]   ;;  %s2456_s7 = inlined_call_operand.vmem [shape: f32[1,32], index: 7, kind: input, shape index: {}]   ;;  %s2457_s8 = inlined_call_operand.vmem [shape: f32[32,32], index: 8, kind: input, shape index: {}]   ;;  %s2458_s9 = inlined_call_operand.vmem [shape: f32[1,32], index: 9, kind: input, shape index: {}]   ;;  %s2459_s10 = inlined_call_operand.vmem [shape: f32[1,32], index: 10, kind: input, shape index: {}]   ;;  %s2460_s11 = inlined_call_operand.vmem [shape: f32[32,16], index: 11, kind: input, shape index: {}]   ;;  %s2461_s12 = inlined_call_operand.vmem [shape: f32[1,16], index: 12, kind: input, shape index: {}]   ;;  %s2462_s13 = inlined_call_operand.vmem [shape: f32[8,32], index: 13, kind: input, shape index: {}]   ;;  %s2463_s14 = inlined_call_operand.vmem [shape: f32[1,32], index: 14, kind: input, shape index: {}]   ;;  %s2464_s15 = inlined_call_operand.vmem [shape: f32[32,32], index: 15, kind: input, shape index: {}]   ;;  %s2465_s16 = inlined_call_operand.vmem [shape: f32[1,32], index: 16, kind: input, shape index: {}]   ;;  %s2466_s17 = inlined_call_operand.vmem [shape: f32[32,32], index: 17, kind: input, shape index: {}]   ;;  %s2467_s18 = inlined_call_operand.vmem [shape: f32[32,64], index: 18, kind: input, shape index: {}]   ;;  %s2468_s19 = inlined_call_operand.vmem [shape: f32[1,64], index: 19, kind: input, shape index: {}]   ;;  %s2469_s20 = inlined_call_operand.hbm [shape: f32[16,64], index: 20, kind: output, shape index: {0}]   ;;  %s2470_s21 = inlined_call_operand.vmem [shape: f32[16,8], index: 21, kind: output, shape index: {1}]   ;;  %s2471_s22 = inlined_call_operand.vmem [shape: f32[16,8], index: 22, kind: output, shape index: {2}]   ;;  %s2472_s23 = inlined_call_operand.vmem [shape: f32[16,8], index: 23, kind: output, shape index: {3}]  }
   0x1   :  { %2484 = sst [smem:[#allocation11_spill]] %s2449_s0 }
   0x2   :  { %2485 = sst [smem:[#allocation12_spill]] %s2450_s1 }
   0x3   :  { %2486 = sst [smem:[#allocation13_spill]] %s2451_s2 }
   0x4   :  { %2487 = sst [smem:[#allocation14_spill]] %s2452_s3 }
   0x5   :  { %2488 = sst [smem:[#allocation15_spill]] %s2453_s4 }
   0x6   :  { %2489 = sst [smem:[#allocation16_spill]] %s2454_s5 }
   0x7   :  { %2490 = sst [smem:[#allocation17_spill]] %s2455_s6 }
   0x8   :  { %2491 = sst [smem:[#allocation18_spill]] %s2456_s7 }
   0x9   :  { %2492 = sst [smem:[#allocation19_spill]] %s2469_s20 }
   0xa   :  { %29 = vsyncpa [#allocation3], 0 }
   0xb   :  { %31 = vsyncpa [#allocation3 + $0x1], 0  ;;  %s2152_s4 = smov 0   ;;  %s2154_s30 = smov 0  }
   0xc   :  { %s2156_s24 = smov 0   ;;  %s2158_s25 = smov 0  }
   0xd LB: > { %2493 = sst [smem:[#allocation5_spill]] %s2013_s4  ;;  %s2173_s5 = sadd.s32 4294967295, %s2025_s25   ;;  %s2025_s25 = sphi %s2158_s25, %s2513_s25   ;;  %s2021_s24 = sphi %s2156_s24, %s2515_s24   ;;  %s2017_s30 = sphi %s2154_s30, %s2517_s30   ;;  %s2013_s4 = sphi %s2152_s4, %s2516_s4  }
   0xe   : > { %2494 = sst [smem:[#allocation6_spill]] %s2021_s24  ;;  %s1698_s1 = sadd.s32 4294967294, %s2025_s25  }
   0xf   : > { %2495 = sst [smem:[#allocation7_spill]] %s2025_s25  ;;  %s2177_s26 = sadd.s32 1, %s2025_s25  }
  0x10   : > { %2496 = sst [smem:[#allocation8_spill]] %s2177_s26  ;;  %s474_s2 = sadd.s32 1, %s2021_s24 }
  0x11   : > { %s471_s6 = ssub.s32 %s2025_s25, %s2177_s26  ;;  %p484_p0 = scmp.ne.s32.totalorder %s2021_s24, %s2017_s30 }
  0x12   : > { %p472_p1 = scmp.eq.s32.totalorder %s471_s6, 0  ;;  %p485_p2 = scmp.eq.s32.totalorder %s2173_s5, 1 }
  0x13   : > { %p490_p3 = scmp.ne.s32.totalorder %s2017_s30, %s2013_s4  ;;  %p491_p4 = scmp.eq.s32.totalorder %s1698_s1, 1 }
  0x14   : > { %s2188_s27 = scalar_select %p472_p1, %s2021_s24, %s474_s2  }
  0x15   : > { %p2190_p5 = por %p485_p2, %p484_p0  ;;  %p2194_p6 = por %p491_p4, %p490_p3 }
  0x16   : > { %2497 = sst [smem:[#allocation9_spill]] %s2188_s27  ;;  %p1701_p7 = scmp.ge.s32.totalorder %s2025_s25, 1 }
  0x17   : > { %s2499_s28 = scalar_select %p2194_p6, 1, 0 }
  0x18   : > { %p655_p8 = scmp.lt.s32.totalorder %s2025_s25, 3 }
  0x19   : > { %2500 = sst [smem:[#allocation10_spill]] %s2499_s28 }
  0x1a   : > { %p656_p9 = pnand %p1701_p7, %p655_p8 }
  0x1b   : > { %s2501_s0 = sld [smem:[#allocation13_spill]] (!%p656_p9)  ;;  %v2027_v3 = vmov (!%p656_p9), 0.0|0.0   ;;  %vm2028_vm0 = vmmov (!%p656_p9), 0   ;;  %v2029_v6 = vmov (!%p656_p9), 0.0   ;;  %p734_p10 = scmp.lt.s32.totalorder (!%p656_p9), %s2173_s5, 1  ;;  %vm770_vm1 = vcmask (!%p656_p9), 523264  }
  0x1c   : > { %659 = sbr.rel (%p656_p9) target bundleno = 2165 (0x875), region = 100  ;;  %1862 = vmatprep.subr.bf16.mxu0 (!%p656_p9), %v2027_v3  ;;  %1788 = vmatprep.mubr.msk.f32.mxu0 (!%p656_p9), %vm2028_vm0, %v2029_v6  ;;  %s2502_s24 = sld [smem:[#allocation11_spill]] (!%p656_p9)  ;;  %vm849_vm3 = vcmask (!%p656_p9), 261120   ;;  %v963_v39 = vld [vmem:[%s2457_s8] sm:$0xff] (!%p656_p9)  ;;  %v964_v40 = vld [vmem:[%s2457_s8 + $0x8] sm:$0xff] (!%p656_p9)  ;;  %v965_v45 = vld [vmem:[%s2457_s8 + $0x10] sm:$0xff] (!%p656_p9) }
  0x1d   : > { %1874 = vmatprep.subr.bf16.mxu1 (!%p656_p9), %v2027_v3  ;;  %1799 = vmatprep.mubr.msk.f32.mxu1 (!%p656_p9), %vm2028_vm0, %v2029_v6  ;;  %s2503_s1 = sld [smem:[#allocation14_spill]] (!%p656_p9)  ;;  %s2504_s27 = sld [smem:[#allocation17_spill]] (!%p656_p9)  ;;  %v1881_v43 = vpack.c.bf16 (!%p656_p9), %v964_v40, %v963_v39  ;;  %v966_v46 = vld [vmem:[%s2457_s8 + $0x18] sm:$0xff] (!%p656_p9)  ;;  %vm1177_vm5 = vcmask (!%p656_p9), 64512  }
  0x1e   : > { %s2505_s29 = sld [smem:[#allocation15_spill]] (!%p656_p9)  ;;  %v1884_v47 = vpack.c.bf16 (!%p656_p9), %v966_v46, %v965_v45  ;;  %v1257_v39 = vld [vmem:[%s2464_s15 + $0x18] sm:$0xff] (!%p656_p9) }
  0x21   : > { %v755_v0 = vld [vmem:[%s2501_s0] sm:$0xff] (!%p656_p9)  ;;  %v756_v1 = vld [vmem:[%s2501_s0 + $0x8] sm:$0xff] (!%p656_p9)  ;;  %v757_v2 = vld [vmem:[%s2501_s0 + $0x10] sm:$0xff] (!%p656_p9) }
  0x22   : > { %v1863_v4 = vpack.c.bf16 (!%p656_p9), %v756_v1, %v755_v0  ;;  %v758_v5 = vld [vmem:[%s2501_s0 + $0x18] sm:$0xff] (!%p656_p9)  ;;  %v759_v8 = vld [vmem:[%s2501_s0 + $0x20] sm:$0xff] (!%p656_p9)  ;;  %v760_v9 = vld [vmem:[%s2501_s0 + $0x28] sm:$0xff] (!%p656_p9) }
  0x23   : > { %v1866_v7 = vpack.c.bf16 %v758_v5, %v757_v2  ;;  %s735_s3 = scalar_select %p734_p10, %s2173_s5, 1  ;;  %v1869_v10 = vpack.c.bf16 %v760_v9, %v759_v8  ;;  %v761_v11 = vld [vmem:[%s2501_s0 + $0x30] sm:$0xff]  ;;  %v762_v12 = vld [vmem:[%s2501_s0 + $0x38] sm:$0xff]  ;;  %v1708_v15 = vld [vmem:[%s2503_s1] ss:$0 sm:$0xff] }
  0x24   : > { %1864 = vmatpush3.bf16.msra.mxu0 %v1863_v4  ;;  %v1872_v13 = vpack.c.bf16 %v762_v12, %v761_v11  ;;  %v878_v27 = vld [vmem:[%s2504_s27] sm:$0xff]  ;;  %v879_v28 = vld [vmem:[%s2504_s27 + $0x8] sm:$0xff]  ;;  %v880_v29 = vld [vmem:[%s2504_s27 + $0x10] sm:$0xff]  ;;  %s2507_s0 = sld [smem:[#allocation18_spill]] }
  0x25   : > { %1865 = vmatprep.subr.bf16.mxu0 %v2027_v3  ;;  %s2234_s4 = sshll.u32 %s735_s3, 3  ;;  %v1875_v30 = vpack.c.bf16 %v879_v28, %v878_v27  ;;  %v881_v31 = vld [vmem:[%s2504_s27 + $0x18] sm:$0xff]  ;;  %v1710_v37 = vld [vmem:[%s2505_s29] ss:$0 sm:$0xff]  ;;  %s2506_s27 = sld [smem:[#allocation16_spill]]  ;;  %v1076_v4 = vld [vmem:[%s2460_s11 + $0x8] sm:$0xff] }
  0x26   : > { %s737_s26 = scalar_lea.vmem %s2502_s24, %s2234_s4  ;;  %v1878_v32 = vpack.c.bf16 %v881_v31, %v880_v29  ;;  %v1075_v2 = vld [vmem:[%s2460_s11] sm:$0xff]  ;;  %v1078_v8 = vld [vmem:[%s2460_s11 + $0x18] sm:$0xff]  ;;  %s749_s28 = scalar_lea.vmem %s2471_s22, %s2234_s4 }
  0x27   : > { %v754_v14 = vld [vmem:[%s737_s26] sm:$0xff]  ;;  %1876 = vmatpush3.bf16.msra.mxu1 %v1875_v30  ;;  %v1887_v5 = vpack.c.bf16 %v1076_v4, %v1075_v2  ;;  %s2030_s3 = smov 120   ;;  %s753_s25 = scalar_lea.vmem %s2472_s23, %s2234_s4  ;;  %v1255_v30 = vld [vmem:[%s2464_s15 + $0x8] sm:$0xff] }
  0x28   : > { %1867 = vmatpush3.bf16.msra.mxu0 %v1866_v7  ;;  %1877 = vmatprep.subr.bf16.mxu1 %v2027_v3  ;;  %v1077_v7 = vld [vmem:[%s2460_s11 + $0x10] sm:$0xff]  ;;  %s2508_s29 = sld [smem:[#allocation12_spill]]  ;;  %v1254_v29 = vld [vmem:[%s2464_s15] sm:$0xff]  ;;  %s745_s20 = scalar_lea.vmem %s2470_s21, %s2234_s4 }
  0x29   : > { %1868 = vmatprep.subr.bf16.mxu0 %v2027_v3  ;;  %v1890_v9 = vpack.c.bf16 %v1078_v8, %v1077_v7  ;;  %v1724_v2 = vld [vmem:[%s2468_s19] ss:$0 sm:$0xff] }
  0x2a   : > { %v1712_v51 = vld [vmem:[%s2507_s0] ss:$0 sm:$0xff] }
  0x2b   : > { %1879 = vmatpush3.bf16.msra.mxu1 %v1878_v32  ;;  %v1711_v41 = vld [vmem:[%s2506_s27] ss:$0 sm:$0xff]  ;;  %s1728_s27 = sshll.u32 %s2173_s5, 7  ;;  %s2031_s5 = smov [#allocation2]  }
  0x2c   : > { %1870 = vmatpush3.bf16.msra.mxu0 %v1869_v10  ;;  %1880 = vmatprep.subr.bf16.mxu1 %v2027_v3  ;;  %s1967_s6 = sshll.u32 %s2031_s5, 4  ;;  %s1968_s6 = int_to_ptr.vmem [resolvable:$false] %s1967_s6 }
  0x2d   : > { %1871 = vmatprep.subr.bf16.mxu0 %v2027_v3 }
  0x2e   : > { %s741_s24 = scalar_lea.vmem %s2508_s29, %s2234_s4 }
  0x2f   : > { %v1159_v28 = vld [vmem:[%s741_s24] sm:$0xff] }
  0x30   : > { %1873 = vmatpush3.bf16.msra.mxu0 %v1872_v13 }
  0x31   : > { %1886 = vmatprep.subr.bf16.mxu0 %v2027_v3 }
  0x33   : > { %1789 = vmatmul.mubr.msk.f32.vlgmr.msra.gmra.mrb[0].mxu0 %vm770_vm1, %v754_v14  ;;  %v1715_v14 = vld [vmem:[%s2458_s9] ss:$0 sm:$0xff] }
  0x34   : > { %1821 = vmatprep.mubr.msk.f32.mxu0 %vm2028_vm0, %v2029_v6  ;;  %1888 = vmatpush3.bf16.msra.mxu0 %v1887_v5 }
  0x35   : > { %1889 = vmatprep.subr.bf16.mxu0 %v2027_v3 }
  0x38   : > { %1891 = vmatpush3.bf16.msra.mxu0 %v1890_v9 }
  0x39   : > { %1898 = vmatprep.subr.bf16.mxu0 %v2027_v3 }
 0x106   : > { %v840_v16 = vpop.f32.mrb[0].mxu0 }
 0x107   : > { %v841_v17 = vadd.f32 %v1708_v15, %v840_v16  ;;  %v1790_v18 = vpop.f32.mrb[1].mxu0  ;;  %v1716_v16 = vld [vmem:[%s2459_s10] ss:$0 sm:$0xff] }
 0x109   : > { %v845_v19 = vmul.f32 0.2, %v841_v17  ;;  %vm844_vm2 = vcmp.ge.f32.partialorder %v841_v17, 0.0 }
 0x10b   : > { %v846_v20 = vsel %vm844_vm2, %v841_v17, %v845_v19  ;;  %v1717_v19 = vld [vmem:[%s2461_s12] ss:$0 sm:$0xff] }
 0x10c   : > { %v850_v21 = vsel %vm849_vm3, %v846_v20, 0.0 }
 0x10d   : > { %851 = vadd.xlane.f32.xlu0 %v850_v21 }
 0x19a   : > { %v852_v22 = vpop.xlane.xlu0 %851 }
 0x19b   : > { %v854_v23 = vmul.f32 0.03125, %v852_v22 }
 0x19d   : > { %v855_v24 = vsub.f32 %v846_v20, %v854_v23 }
 0x19f   : > { %v856_v25 = vmul.f32 %v855_v24, %v855_v24 }
 0x1a1   : > { %v857_v26 = vsel %vm849_vm3, %v856_v25, 0.0  ;;  %v1169_v25 = vld [vmem:[%s2462_s13] sm:$0xff] }
 0x1a2   : > { %858 = vadd.xlane.f32.xlu0 %v857_v26 }
 0x22f   : > { %v859_v33 = vpop.xlane.xlu0 %858 }
 0x230   : > { %v860_v34 = vmul.f32 0.03125, %v859_v33  ;;  %v1893_v33 = vpack.c.bf16 %v1255_v30, %v1254_v29 }
 0x232   : > { %v861_v35 = vadd.f32 1e-05, %v860_v34 }
 0x234   : > { %1953 = vrsqrt.f32 %v861_v35  ;;  %v1339_v35 = vld [vmem:[%s2466_s17] sm:$0xff] }
 0x23e   : > { %v1954_v36 = vpop.eup %1953 }
 0x23f   : > { %v863_v38 = vmul.f32 %v1954_v36, %v855_v24  ;;  %v1340_v36 = vld [vmem:[%s2466_s17 + $0x8] sm:$0xff] }
 0x241   : > { %v870_v42 = vmul.f32 %v1710_v37, %v863_v38  ;;  %v1899_v37 = vpack.c.bf16 %v1340_v36, %v1339_v35  ;;  %v1256_v38 = vld [vmem:[%s2464_s15 + $0x10] sm:$0xff] }
 0x242   : > { %v1896_v40 = vpack.c.bf16 %v1257_v39, %v1256_v38 }
 0x243   : > { %v877_v44 = vadd.f32 %v1711_v41, %v870_v42  ;;  %v1341_v41 = vld [vmem:[%s2466_s17 + $0x10] sm:$0xff]  ;;  %v1342_v42 = vld [vmem:[%s2466_s17 + $0x18] sm:$0xff] }
 0x245   : > { %1800 = vmatmul.mubr.msk.f32.vlgmr.msra.gmra.mrb[0].mxu1 %vm849_vm3, %v877_v44  ;;  %v962_v48 = vand.u32 2147483647, %v877_v44  ;;  %v1719_v44 = vld [vmem:[%s2463_s14] ss:$0 sm:$0xff] }
 0x246   : > { %1882 = vmatpush3.bf16.msra.mxu1 %v1881_v43  ;;  %1810 = vmatprep.mubr.msk.f32.mxu1 %vm2028_vm0, %v2029_v6  ;;  %v1902_v43 = vpack.c.bf16 %v1342_v42, %v1341_v41 }
 0x247   : > { %1883 = vmatprep.subr.bf16.mxu1 %v2027_v3 }
 0x24a   : > { %1885 = vmatpush3.bf16.msra.mxu1 %v1884_v47 }
 0x24b   : > { %1824 = vmatprep.subr.mxu1 %v2029_v6 }
 0x24d   : > { %1811 = vmatmul.mubr.msk.f32.vlgmr.msra.gmra.mrb[2].mxu1 %vm849_vm3, %v962_v48 }
 0x24e   : > { %1826 = vmatprep.mubr.msk.f32.mxu1 %vm2028_vm0, %v2029_v6  ;;  %1825 = vmatpush3.msra.mxu1 %v1169_v25 }
 0x24f   : > { %1892 = vmatprep.subr.bf16.mxu1 %v2027_v3 }
 0x318   : > { %v958_v49 = vpop.f32.mrb[0].mxu1 }
 0x319   : > { %v1801_v50 = vpop.f32.mrb[1].mxu1  ;;  %v959_v55 = vadd.f32 %v1712_v51, %v958_v49  ;;  %v1422_v51 = vld [vmem:[%s2467_s18] sm:$0xff] }
 0x320   : > { %v1036_v52 = vpop.f32.mrb[2].mxu1 }
 0x321   : > { %v1040_v53 = vmul.f32 0.2, %v1036_v52  ;;  %v1812_v54 = vpop.f32.mrb[3].mxu1  ;;  %v1423_v52 = vld [vmem:[%s2467_s18 + $0x8] sm:$0xff] }
 0x322   : > { %v1424_v54 = vld [vmem:[%s2467_s18 + $0x10] sm:$0xff] }
 0x323   : > { %v1041_v56 = vsub.f32 1.0, %v1040_v53  ;;  %v1905_v53 = vpack.c.bf16 %v1423_v52, %v1422_v51 }
 0x325   : > { %v1042_v57 = vmul.f32 %v1041_v56, %v959_v55 }
 0x327   : > { %vm1043_vm4 = vcmp.ge.f32.partialorder %v1042_v57, 0.0  ;;  %v1044_v58 = vmul.f32 0.2, %v1042_v57 }
 0x329   : > { %v1045_v59 = vsel %vm1043_vm4, %v1042_v57, %v1044_v58  ;;  %v1721_v58 = vld [vmem:[%s2465_s16] ss:$0 sm:$0xff] }
 0x32a   : > { %v1048_v60 = vsel %vm849_vm3, %v1045_v59, 0.0 }
 0x32b   : > { %1049 = vadd.xlane.f32.xlu1 %v1048_v60 }
 0x3b8   : > { %v1050_v61 = vpop.xlane.xlu1 %1049 }
 0x3b9   : > { %v1051_v62 = vmul.f32 0.03125, %v1050_v61 }
 0x3bb   : > { %v1052_v63 = vsub.f32 %v1045_v59, %v1051_v62 }
 0x3bd   : > { %v1053_v0 = vmul.f32 %v1052_v63, %v1052_v63 }
 0x3bf   : > { %v1054_v1 = vsel %vm849_vm3, %v1053_v0, 0.0 }
 0x3c0   : > { %1055 = vadd.xlane.f32.xlu1 %v1054_v1 }
 0x44d   : > { %v1056_v10 = vpop.xlane.xlu1 %1055 }
 0x44e   : > { %v1057_v11 = vmul.f32 0.03125, %v1056_v10 }
 0x450   : > { %v1058_v12 = vadd.f32 1e-05, %v1057_v11 }
 0x452   : > { %1955 = vrsqrt.f32 %v1058_v12 }
 0x45c   : > { %v1956_v13 = vpop.eup %1955 }
 0x45d   : > { %v1060_v15 = vmul.f32 %v1956_v13, %v1052_v63 }
 0x45f   : > { %v1067_v17 = vmul.f32 %v1715_v14, %v1060_v15 }
 0x461   : > { %v1074_v18 = vadd.f32 %v1716_v16, %v1067_v17 }
 0x463   : > { %1822 = vmatmul.mubr.msk.f32.vlgmr.msra.gmra.mrb[2].mxu0 %vm849_vm3, %v1074_v18 }
 0x464   : > { %1848 = vmatprep.mubr.msk.f32.mxu0 %vm2028_vm0, %v2029_v6  ;;  %1900 = vmatpush3.bf16.msra.mxu0 %v1899_v37 }
 0x465   : > { %1901 = vmatprep.subr.bf16.mxu0 %v2027_v3 }
 0x468   : > { %1903 = vmatpush3.bf16.msra.mxu0 %v1902_v43 }
 0x536   : > { %v1155_v20 = vpop.f32.mrb[2].mxu0 }
 0x537   : > { %v1156_v21 = vadd.f32 %v1717_v19, %v1155_v20  ;;  %v1823_v22 = vpop.f32.mrb[3].mxu0 }
 0x539   : > { %v1160_v23 = vmul.f32 0.5, %v1156_v21  ;;  %1516 = vrot.lane.b32.xlu1 %v1156_v21, %s2030_s3  ;;  %1514 = vst.msk [vmem:[%s749_s28] sm:$0xff] %vm1177_vm5, %v1156_v21  ;;  %s2509_s28 = sld [smem:[#allocation19_spill]] }
 0x53b   : > { %v1161_v24 = vmul.f32 1.442695, %v1160_v23 }
 0x53d   : > { %1957 = vpow2.f32 %v1161_v24 }
 0x53f   : > { %s2406_s1 = scalar_lea.hbm %s2509_s28, %s1728_s27 }
 0x547   : > { %v1958_v26 = vpop.eup %1957 }
 0x548   : > { %1164 = vrot.lane.b32.xlu0 %v1958_v26, %s2030_s3 }
 0x5ab   : > { %v1517_v27 = vpop.permute.xlu1 %1516 }
 0x5ac   : > { %1519 = vst.msk [vmem:[%s753_s25] sm:$0xff] %vm1177_vm5, %v1517_v27  ;;  %s713_s25 = sand.u32 1, %s2017_s30  }
 0x5ad   : > { %s1702_s0 = sshll.u32 %s713_s25, 3  ;;  %s1521_s2 = scalar_lea.sflag [#allocation3], %s713_s25 }
 0x5ae   : > { %s715_s29 = scalar_lea.vmem [#allocation2], %s1702_s0 }
 0x5af   : > { %s1546_s4 = sshll.u32 %s715_s29, 4  ;;  %s2408_s4 = int_to_ptr.vmem [resolvable:$true] %s1546_s4 }
 0x5b0   : > { %s1963_s3 = scalar_lea.vmem %s2408_s4, 128  ;;  %p1970_p0 = scmp.lt.s32.totalorder %s2408_s4, %s1968_s6 }
 0x5b1   : > { %p1964_p11 = scmp.ne.s32.totalorder %s2408_s4, %s1963_s3 }
 0x5b3   : > { %p1965_p12 = pnand %p1964_p11, %p2190_p5 }
 0x5b5   : > { %p1966_p13 = pneg %p1965_p12 }
 0x5ba   : > { %v1165_v31 = vpop.permute.xlu0 %1164 }
 0x5bb   : > { %v1167_v32 = vmul.f32 %v1165_v31, %v1159_v28 }
 0x5bd   : > { %v1168_v34 = vadd.f32 %v1167_v32, %v1156_v21 }
 0x5bf   : > { %1513 = vst.msk [vmem:[%s745_s20] sm:$0xff] %vm1177_vm5, %v1168_v34  ;;  %1827 = vmatmul.mubr.msk.f32.vlgmr.msra.gmra.mrb[4].mxu1 %vm1177_vm5, %v1168_v34  ;;  %s1969_s20 = scalar_lea.vmem %s1968_s6, 256 }
 0x5c0   : > { %1894 = vmatpush3.bf16.msra.mxu1 %v1893_v33  ;;  %1837 = vmatprep.mubr.msk.f32.mxu1 %vm2028_vm0, %v2029_v6  ;;  %p1971_p1 = scmp.lt.s32.totalorder %s1969_s20, %s1963_s3 }
 0x5c1   : > { %1895 = vmatprep.subr.bf16.mxu1 %v2027_v3 }
 0x5c2   : > { %p1972_p2 = por %p1971_p1, %p1970_p0 }
 0x5c4   : > { %1897 = vmatpush3.bf16.msra.mxu1 %v1896_v40  ;;  %p1973_p3 = pnand %p1972_p2, %p1966_p13 }
 0x5c5   : > { %1904 = vmatprep.subr.bf16.mxu1 %v2027_v3 }
 0x692   : > { %v1247_v45 = vpop.f32.mrb[4].mxu1 }
 0x693   : > { %v1248_v46 = vadd.f32 %v1719_v44, %v1247_v45  ;;  %v1828_v47 = vpop.f32.mrb[5].mxu1 }
 0x695   : > { %vm1251_vm6 = vcmp.ge.f32.partialorder %v1248_v46, 0.0  ;;  %v1252_v48 = vmul.f32 0.2, %v1248_v46 }
 0x697   : > { %v1253_v49 = vsel %vm1251_vm6, %v1248_v46, %v1252_v48 }
 0x698   : > { %v1338_v50 = vand.u32 2147483647, %v1253_v49  ;;  %1838 = vmatmul.mubr.msk.f32.vlgmr.msra.gmra.mrb[6].mxu1 %vm849_vm3, %v1253_v49 }
 0x699   : > { %1859 = vmatprep.mubr.msk.f32.mxu1 %vm2028_vm0, %v2029_v6  ;;  %1906 = vmatpush3.bf16.msra.mxu1 %v1905_v53  ;;  %v1425_v6 = vld [vmem:[%s2467_s18 + $0x18] sm:$0xff] }
 0x69a   : > { %1849 = vmatmul.mubr.msk.f32.vlgmr.msra.gmra.mrb[4].mxu0 %vm849_vm3, %v1338_v50  ;;  %1907 = vmatprep.subr.bf16.mxu1 %v2027_v3  ;;  %v1908_v55 = vpack.c.bf16 %v1425_v6, %v1424_v54 }
 0x69d   : > { %1909 = vmatpush3.bf16.msra.mxu1 %v1908_v55 }
 0x76b   : > { %v1334_v56 = vpop.f32.mrb[6].mxu1 }
 0x76c   : > { %v1839_v57 = vpop.f32.mrb[7].mxu1  ;;  %v1335_v61 = vadd.f32 %v1721_v58, %v1334_v56 }
 0x76d   : > { %v1412_v59 = vpop.f32.mrb[4].mxu0 }
 0x76e   : > { %v1416_v60 = vmul.f32 0.2, %v1412_v59  ;;  %v1850_v3 = vpop.f32.mrb[5].mxu0 }
 0x770   : > { %v1417_v62 = vsub.f32 1.0, %v1416_v60 }
 0x772   : > { %v1418_v63 = vmul.f32 %v1417_v62, %v1335_v61 }
 0x774   : > { %vm1419_vm7 = vcmp.ge.f32.partialorder %v1418_v63, 0.0  ;;  %v1420_v0 = vmul.f32 0.2, %v1418_v63 }
 0x776   : > { %v1421_v1 = vsel %vm1419_vm7, %v1418_v63, %v1420_v0 }
 0x777   : > { %1860 = vmatmul.mubr.msk.f32.vlgmr.msra.gmra.mrb[8].mxu1 %vm849_vm3, %v1421_v1 }
 0x84a   : > { %v1502_v4 = vpop.f32.mrb[8].mxu1 }
 0x84b   : > { %v1503_v5 = vadd.f32 %v1724_v2, %v1502_v4  ;;  %v1861_v7 = vpop.f32.mrb[9].mxu1 }
 0x84d   : > { %v1726_v8 = vmul.f32 -1.442695, %v1503_v5 }
 0x84f   : > { %1959 = vpow2.f32 %v1726_v8 }
 0x859   : > { %v1960_v9 = vpop.eup %1959 }
 0x85a   : > { %v1509_v10 = vadd.f32 1.0, %v1960_v9 }
 0x85c   : > { %1961 = vrcp.f32 %v1509_v10 }
 0x866   : > { %v1962_v11 = vpop.eup %1961 }
 0x867   : > { %1512 = vst.msk [vmem:[%s715_s29] sm:$0xff] %vm770_vm1, %v1962_v11 }
 0x868   : > { %1976 = shalt.err (!%p1973_p3)
}
 0x869   : > { %s1977_s25 = scalar_lea.hbm %s2406_s1, 128  ;;  %s1981_s29 = scalar_lea.hbm %s2509_s28, 256 }
 0x86a   : > { %p1978_p4 = scmp.ne.s32.totalorder %s2406_s1, %s1977_s25  ;;  %p1982_p9 = scmp.lt.u32.totalorder %s2406_s1, %s2509_s28 }
 0x86b   : > { %p1983_p10 = scmp.lt.u32.totalorder %s1981_s29, %s1977_s25  ;;  %p1985_p12 = scmp.lt.u32.totalorder %s1977_s25, %s2406_s1 }
 0x86c   : > { %p1979_p7 = pnand %p1978_p4, %p2190_p5 }
 0x86d   : > { %p1984_p11 = por %p1983_p10, %p1982_p9 }
 0x86e   : > { %p1980_p8 = pneg %p1979_p7 }
 0x86f   : > { %p1986_p13 = por %p1985_p12, %p1984_p11 }
 0x871   : > { %p1987_p0 = pnand %p1986_p13, %p1980_p8 }
 0x873   : > { %1990 = shalt.err (!%p1987_p0)
}
 0x874   : > { %1910 = dma.vmem_to_hbm [thread:$0]  (%p2190_p5), %s2408_s4, 128, %s2406_s1, %s1521_s2  }
 0x875 PF: > { %s2510_s3 = sld [smem:[#allocation7_spill]]  ;;  %s2511_s5 = sld [smem:[#allocation5_spill]] }
 0x87b   : > { %p1916_p1 = scmp.ge.s32.totalorder %s2510_s3, 2  ;;  %s1567_s20 = sand.u32 1, %s2511_s5  }
 0x87c   : > { %s1568_s0 = scalar_lea.sflag [#allocation3], %s1567_s20 }
 0x87d   : > { %p1913_p2 = pnand %p1916_p1, %p2194_p6 }
 0x87f   : > { %2008 = dma.done.wait (!%p1913_p2), %s1568_s0, 128  }
 0x880   : > { %2010 = vsyncadd (!%p1913_p2), %s1568_s0, 4294967168  ;;  %s2513_s25 = sld [smem:[#allocation8_spill]]  ;;  %s2514_s27 = sld [smem:[#allocation6_spill]] }
 0x881   : > { %s2515_s24 = sld [smem:[#allocation9_spill]]  ;;  %s2516_s4 = smov %s2017_s30 }
 0x886   : > { %p34_p3 = scmp.ge.s32.totalorder %s2513_s25, 4   ;;  %s2517_s30 = smov %s2514_s27 }
 0x888   :  { %36 = sbr.rel (!%p34_p3) target bundleno = 13 (0xd), region = 174 }
 0x88f   :  { %1594 = vsyncpa [#allocation3], 1 }
 0x890   :  { %1596 = vsyncpa [#allocation3 + $0x1], 1 }

</bundles_post_ra>
